<compile_context>
chip_gen: v5e
topology: v5e:2x2
jax: 0.10.0
libtpu: 0.0.40
codegen_flags: <defaults>
</compile_context>

<pallas_src>
import functools

import jax
import jax.numpy as jnp
from jax.experimental import pallas as pl
from jax.experimental.pallas import tpu as pltpu


def _dwsep_fused_kernel(x_ref, wc_ref, mask_ref, o_ref, slab_ref, *,
                        W, K, dilation, padding):
    # x_ref   : (Cin_p, L)          batch folded onto lanes, L = N*H*W
    # wc_ref  : (Cout, K*K*Cin_p)   fused depthwise*pointwise weights
    # mask_ref: (K*K, L)            1.0 where a tap reads inside its own image
    # o_ref   : (Cout, L)
    # slab_ref: (K*K*Cin_p, L)      VMEM scratch holding the K*K shifted copies
    cin_p, L = x_ref.shape
    cdt = slab_ref.dtype

    x = x_ref[...].astype(cdt)            # loaded once
    mask = mask_ref[...].astype(cdt)      # hoisted out of the tap loop (single vld)

    for kh in range(K):
        dh = kh * dilation - padding
        for kw in range(K):
            dwc = kw * dilation - padding
            off = dh * W + dwc
            tap = kh * K + kw
            # Bring x[:, idx + off] to lane idx (cyclic, XLU).  Out-of-image taps
            # are zeroed by the mask, which also kills any cross-image / wrap reads
            # introduced by folding the batch onto the lane axis.
            shifted = pltpu.roll(x, shift=(-off) % L, axis=1) if off != 0 else x
            if not (dh == 0 and dwc == 0):
                shifted = shifted * mask[tap:tap + 1, :]
            slab_ref[tap * cin_p:(tap + 1) * cin_p, :] = shifted

    # Single MXU matmul performs depthwise weighting + 1x1 channel mixing together
    # (contraction dim = K*K*Cin_p), f32 accumulate.
    out = jnp.dot(wc_ref[...].astype(cdt), slab_ref[...],
                  preferred_element_type=jnp.float32)          # (Cout, L)
    o_ref[...] = out.astype(o_ref.dtype)


def depthwise_separable_conv2d(x, w_dw, w_pw, *, padding, dilation=1,
                               compute_dtype=None):
    """x: (N, Cin, H, W); w_dw: (Cin, K, K); w_pw: (Cout, Cin). Returns (N, Cout, H, W).

    compute_dtype: dtype for the roll/mask stage and MXU operands (f32 accumulate).
    Pass jnp.bfloat16 on v6e/v7x at large sizes; default keeps x.dtype (safe on v5e).
    """
    N, Cin, H, W = x.shape
    K = w_dw.shape[-1]
    Cout = w_pw.shape[0]
    HW = H * W
    L = N * HW
    cdt = jnp.dtype(compute_dtype) if compute_dtype is not None else x.dtype

    # TODO(synk): only stride=1, same-size convolutions (2*padding == dilation*(K-1))
    # are handled — matching how DepthwiseConv2d is used in attention_unet.py.
    assert 2 * padding == dilation * (K - 1), "kernel assumes same-size padding"
    assert HW % 128 == 0, "flattened spatial dim must be a multiple of 128 lanes"

    cin_p = -(-Cin // 8) * 8     # pad channels to a sublane tile (zero-weighted below)

    # ---- wrapper-side layout plumbing (cheap at these sizes) ----
    # Fold batch onto the lane axis: lane l = n*HW + r*W + c.
    x_fold = jnp.transpose(x, (1, 0, 2, 3)).reshape(Cin, L)
    if cin_p > Cin:
        x_fold = jnp.pad(x_fold, ((0, cin_p - Cin), (0, 0)))

    # Fused weights: W_comb[co, t*Cin_p + ci] = w_pw[co, ci] * w_dw[ci, t].
    wdw_flat = w_dw.reshape(Cin, K * K)
    w_comb = w_pw[:, None, :] * jnp.transpose(wdw_flat)[None, :, :]   # (Cout, K*K, Cin)
    if cin_p > Cin:
        w_comb = jnp.pad(w_comb, ((0, 0), (0, 0), (0, cin_p - Cin)))
    w_comb = w_comb.reshape(Cout, K * K * cin_p)

    # Border masks (K*K, HW): 1.0 where a tap reads inside the image, 0.0 where it
    # would read the (virtual) zero padding.  Tiled per image along the folded lane
    # axis; resident across the (trivial) grid, DMA'd once.
    rows = jnp.arange(H, dtype=jnp.int32)[:, None]
    cols = jnp.arange(W, dtype=jnp.int32)[None, :]
    masks = []
    for kh in range(K):
        dh = kh * dilation - padding
        for kw in range(K):
            dwc = kw * dilation - padding
            valid = ((rows + dh >= 0) & (rows + dh < H) &
                     (cols + dwc >= 0) & (cols + dwc < W))
            masks.append(valid.reshape(HW))
    tap_mask = jnp.tile(jnp.stack(masks).astype(x.dtype), (1, N))      # (K*K, L)

    kernel = functools.partial(_dwsep_fused_kernel, W=W, K=K,
                               dilation=dilation, padding=padding)

    # Size-aware scoped-VMEM request (inputs/outputs double-buffered + slab scratch),
    # never below anything the tiny demo needs, never above any chip's default here.
    itm = jnp.dtype(x.dtype).itemsize
    est = (2 * (cin_p * L + K * K * L + Cout * L) * itm
           + K * K * cin_p * L * jnp.dtype(cdt).itemsize
           + Cout * K * K * cin_p * itm)
    vmem_limit = int(min(max(2 * est, 16 * 1024 * 1024), 64 * 1024 * 1024))

    out_fold = pl.pallas_call(
        kernel,
        out_shape=jax.ShapeDtypeStruct((Cout, L), x.dtype),
        grid_spec=pltpu.PrefetchScalarGridSpec(
            num_scalar_prefetch=0,
            grid=(1,),                      # whole batch in one step: no per-step overhead
            in_specs=[
                pl.BlockSpec((cin_p, L), lambda i: (0, 0)),
                pl.BlockSpec((Cout, K * K * cin_p), lambda i: (0, 0)),
                pl.BlockSpec((K * K, L), lambda i: (0, 0)),
            ],
            out_specs=pl.BlockSpec((Cout, L), lambda i: (0, 0)),
            scratch_shapes=[pltpu.VMEM((K * K * cin_p, L), cdt)],
        ),
        compiler_params=pltpu.CompilerParams(
            dimension_semantics=("arbitrary",),
            vmem_limit_bytes=vmem_limit),
    )(x_fold, w_comb, tap_mask)

    # (Cout, N*HW) -> (N, Cout, H, W)
    return jnp.transpose(out_fold.reshape(Cout, N, H, W), (1, 0, 2, 3))


def _reference(x, w_dw, w_pw, *, padding, dilation=1):
    """Pure-JAX reference using lax.conv_general_dilated (matches PyTorch semantics)."""
    Cin = x.shape[1]
    dw = jax.lax.conv_general_dilated(
        x, w_dw[:, None, :, :],
        window_strides=(1, 1),
        padding=[(padding, padding), (padding, padding)],
        rhs_dilation=(dilation, dilation),
        dimension_numbers=("NCHW", "OIHW", "NCHW"),
        feature_group_count=Cin,
    )
    pw = jax.lax.conv_general_dilated(
        dw, w_pw[:, :, None, None],
        window_strides=(1, 1),
        padding=[(0, 0), (0, 0)],
        dimension_numbers=("NCHW", "OIHW", "NCHW"),
    )
    return pw


if __name__ == "__main__":
    key = jax.random.PRNGKey(0)
    k1, k2, k3 = jax.random.split(key, 3)

    N, Cin, H, W = 2, 4, 16, 16
    Cout, K, padding, dilation = 8, 3, 1, 1

    x = jax.random.normal(k1, (N, Cin, H, W), dtype=jnp.float32)
    # PyTorch parameter shapes: depthwise (Cin,1,K,K) squeezed; pointwise (Cout,Cin,1,1)
    # squeezed; bias=False.
    w_dw = jax.random.normal(k2, (Cin, K, K), dtype=jnp.float32) * 0.1
    w_pw = jax.random.normal(k3, (Cout, Cin), dtype=jnp.float32) * 0.1

    out = depthwise_separable_conv2d(x, w_dw, w_pw, padding=padding, dilation=dilation)
    out = jax.block_until_ready(out)

    ref = _reference(x, w_dw, w_pw, padding=padding, dilation=dilation)
    assert out.shape == (N, Cout, H, W)
    assert jnp.allclose(out, ref, atol=1e-4, rtol=1e-4), "mismatch vs reference conv"

    print("KERNEL_OK")
</pallas_src>

<mosaic_0001>
module attributes {stable_mosaic.version = 11 : i64} {
  func.func @_dwsep_fused_kernel(%arg0: i32, %arg1: memref<8x512xf32, #tpu.memory_space<vmem>>, %arg2: memref<8x72xf32, #tpu.memory_space<vmem>>, %arg3: memref<9x512xf32, #tpu.memory_space<vmem>>, %arg4: memref<8x512xf32, #tpu.memory_space<vmem>>, %arg5: memref<72x512xf32, #tpu.memory_space<vmem>>) attributes {dimension_semantics = [#tpu.dimension_semantics<arbitrary>], iteration_bounds = array<i64: 1>, scalar_prefetch = 0 : i64, scratch_operands = 1 : i64, tpu.core_type = #tpu.core_type<tc>, window_params = [{pipeline_mode = #tpu.pipeline_mode<synchronous>, transform_indices = @transform_0, window_bounds = array<i64: 8, 512>}, {pipeline_mode = #tpu.pipeline_mode<synchronous>, transform_indices = @transform_1, window_bounds = array<i64: 8, 72>}, {pipeline_mode = #tpu.pipeline_mode<synchronous>, transform_indices = @transform_2, window_bounds = array<i64: 9, 512>}, {pipeline_mode = #tpu.pipeline_mode<synchronous>, transform_indices = @transform_3, window_bounds = array<i64: 8, 512>}]} {
    %c0 = arith.constant 0 : index
    %c0_0 = arith.constant 0 : index
    %0 = vector.load %arg1[%c0, %c0_0] : memref<8x512xf32, #tpu.memory_space<vmem>>, vector<8x512xf32>
    %c0_1 = arith.constant 0 : index
    %c0_2 = arith.constant 0 : index
    %1 = vector.load %arg3[%c0_1, %c0_2] : memref<9x512xf32, #tpu.memory_space<vmem>>, vector<9x512xf32>
    %c17_i32 = arith.constant 17 : i32
    %2 = tpu.dynamic_rotate %0 by %c17_i32 dim 1 : vector<8x512xf32>, i32 -> vector<8x512xf32>
    %3 = vector.extract_strided_slice %1 {offsets = [0, 0], sizes = [1, 512], strides = [1, 1]} : vector<9x512xf32> to vector<1x512xf32>
    %4 = vector.broadcast %3 : vector<1x512xf32> to vector<8x512xf32>
    %5 = arith.mulf %2, %4 : vector<8x512xf32>
    %c0_3 = arith.constant 0 : index
    %c0_4 = arith.constant 0 : index
    %6 = vector.load %arg5[%c0_3, %c0_4] : memref<72x512xf32, #tpu.memory_space<vmem>>, vector<8x512xf32>
    tpu.vector_store %arg5[%c0_3, %c0_4], %5 {strides = array<i32>} : memref<72x512xf32, #tpu.memory_space<vmem>>, vector<8x512xf32>,
    %c16_i32 = arith.constant 16 : i32
    %7 = tpu.dynamic_rotate %0 by %c16_i32 dim 1 : vector<8x512xf32>, i32 -> vector<8x512xf32>
    %8 = vector.extract_strided_slice %1 {offsets = [1, 0], sizes = [1, 512], strides = [1, 1]} : vector<9x512xf32> to vector<1x512xf32>
    %9 = vector.broadcast %8 : vector<1x512xf32> to vector<8x512xf32>
    %10 = arith.mulf %7, %9 : vector<8x512xf32>
    %c8 = arith.constant 8 : index
    %c0_5 = arith.constant 0 : index
    %11 = vector.load %arg5[%c8, %c0_5] : memref<72x512xf32, #tpu.memory_space<vmem>>, vector<8x512xf32>
    tpu.vector_store %arg5[%c8, %c0_5], %10 {strides = array<i32>} : memref<72x512xf32, #tpu.memory_space<vmem>>, vector<8x512xf32>,
    %c15_i32 = arith.constant 15 : i32
    %12 = tpu.dynamic_rotate %0 by %c15_i32 dim 1 : vector<8x512xf32>, i32 -> vector<8x512xf32>
    %13 = vector.extract_strided_slice %1 {offsets = [2, 0], sizes = [1, 512], strides = [1, 1]} : vector<9x512xf32> to vector<1x512xf32>
    %14 = vector.broadcast %13 : vector<1x512xf32> to vector<8x512xf32>
    %15 = arith.mulf %12, %14 : vector<8x512xf32>
    %c16 = arith.constant 16 : index
    %c0_6 = arith.constant 0 : index
    %16 = vector.load %arg5[%c16, %c0_6] : memref<72x512xf32, #tpu.memory_space<vmem>>, vector<8x512xf32>
    tpu.vector_store %arg5[%c16, %c0_6], %15 {strides = array<i32>} : memref<72x512xf32, #tpu.memory_space<vmem>>, vector<8x512xf32>,
    %c1_i32 = arith.constant 1 : i32
    %17 = tpu.dynamic_rotate %0 by %c1_i32 dim 1 : vector<8x512xf32>, i32 -> vector<8x512xf32>
    %18 = vector.extract_strided_slice %1 {offsets = [3, 0], sizes = [1, 512], strides = [1, 1]} : vector<9x512xf32> to vector<1x512xf32>
    %19 = vector.broadcast %18 : vector<1x512xf32> to vector<8x512xf32>
    %20 = arith.mulf %17, %19 : vector<8x512xf32>
    %c24 = arith.constant 24 : index
    %c0_7 = arith.constant 0 : index
    %21 = vector.load %arg5[%c24, %c0_7] : memref<72x512xf32, #tpu.memory_space<vmem>>, vector<8x512xf32>
    tpu.vector_store %arg5[%c24, %c0_7], %20 {strides = array<i32>} : memref<72x512xf32, #tpu.memory_space<vmem>>, vector<8x512xf32>,
    %c32 = arith.constant 32 : index
    %c0_8 = arith.constant 0 : index
    %22 = vector.load %arg5[%c32, %c0_8] : memref<72x512xf32, #tpu.memory_space<vmem>>, vector<8x512xf32>
    tpu.vector_store %arg5[%c32, %c0_8], %0 {strides = array<i32>} : memref<72x512xf32, #tpu.memory_space<vmem>>, vector<8x512xf32>,
    %c511_i32 = arith.constant 511 : i32
    %23 = tpu.dynamic_rotate %0 by %c511_i32 dim 1 : vector<8x512xf32>, i32 -> vector<8x512xf32>
    %24 = vector.extract_strided_slice %1 {offsets = [5, 0], sizes = [1, 512], strides = [1, 1]} : vector<9x512xf32> to vector<1x512xf32>
    %25 = vector.broadcast %24 : vector<1x512xf32> to vector<8x512xf32>
    %26 = arith.mulf %23, %25 : vector<8x512xf32>
    %c40 = arith.constant 40 : index
    %c0_9 = arith.constant 0 : index
    %27 = vector.load %arg5[%c40, %c0_9] : memref<72x512xf32, #tpu.memory_space<vmem>>, vector<8x512xf32>
    tpu.vector_store %arg5[%c40, %c0_9], %26 {strides = array<i32>} : memref<72x512xf32, #tpu.memory_space<vmem>>, vector<8x512xf32>,
    %c497_i32 = arith.constant 497 : i32
    %28 = tpu.dynamic_rotate %0 by %c497_i32 dim 1 : vector<8x512xf32>, i32 -> vector<8x512xf32>
    %29 = vector.extract_strided_slice %1 {offsets = [6, 0], sizes = [1, 512], strides = [1, 1]} : vector<9x512xf32> to vector<1x512xf32>
    %30 = vector.broadcast %29 : vector<1x512xf32> to vector<8x512xf32>
    %31 = arith.mulf %28, %30 : vector<8x512xf32>
    %c48 = arith.constant 48 : index
    %c0_10 = arith.constant 0 : index
    %32 = vector.load %arg5[%c48, %c0_10] : memref<72x512xf32, #tpu.memory_space<vmem>>, vector<8x512xf32>
    tpu.vector_store %arg5[%c48, %c0_10], %31 {strides = array<i32>} : memref<72x512xf32, #tpu.memory_space<vmem>>, vector<8x512xf32>,
    %c496_i32 = arith.constant 496 : i32
    %33 = tpu.dynamic_rotate %0 by %c496_i32 dim 1 : vector<8x512xf32>, i32 -> vector<8x512xf32>
    %34 = vector.extract_strided_slice %1 {offsets = [7, 0], sizes = [1, 512], strides = [1, 1]} : vector<9x512xf32> to vector<1x512xf32>
    %35 = vector.broadcast %34 : vector<1x512xf32> to vector<8x512xf32>
    %36 = arith.mulf %33, %35 : vector<8x512xf32>
    %c56 = arith.constant 56 : index
    %c0_11 = arith.constant 0 : index
    %37 = vector.load %arg5[%c56, %c0_11] : memref<72x512xf32, #tpu.memory_space<vmem>>, vector<8x512xf32>
    tpu.vector_store %arg5[%c56, %c0_11], %36 {strides = array<i32>} : memref<72x512xf32, #tpu.memory_space<vmem>>, vector<8x512xf32>,
    %c495_i32 = arith.constant 495 : i32
    %38 = tpu.dynamic_rotate %0 by %c495_i32 dim 1 : vector<8x512xf32>, i32 -> vector<8x512xf32>
    %39 = vector.extract_strided_slice %1 {offsets = [8, 0], sizes = [1, 512], strides = [1, 1]} : vector<9x512xf32> to vector<1x512xf32>
    %40 = vector.broadcast %39 : vector<1x512xf32> to vector<8x512xf32>
    %41 = arith.mulf %38, %40 : vector<8x512xf32>
    %c64 = arith.constant 64 : index
    %c0_12 = arith.constant 0 : index
    %42 = vector.load %arg5[%c64, %c0_12] : memref<72x512xf32, #tpu.memory_space<vmem>>, vector<8x512xf32>
    tpu.vector_store %arg5[%c64, %c0_12], %41 {strides = array<i32>} : memref<72x512xf32, #tpu.memory_space<vmem>>, vector<8x512xf32>,
    %c0_13 = arith.constant 0 : index
    %c0_14 = arith.constant 0 : index
    %43 = vector.load %arg2[%c0_13, %c0_14] : memref<8x72xf32, #tpu.memory_space<vmem>>, vector<8x72xf32>
    %c0_15 = arith.constant 0 : index
    %c0_16 = arith.constant 0 : index
    %44 = vector.load %arg5[%c0_15, %c0_16] : memref<72x512xf32, #tpu.memory_space<vmem>>, vector<72x512xf32>
    %cst = arith.constant dense<0.000000e+00> : vector<8x512xf32>
    %45 = tpu.matmul %43, %44, %cst {dimension_numbers = #tpu.dot_dimension_numbers<[1], [0], [0], [1], [0, 0, 1, 1], [], []>} : vector<8x72xf32>, vector<72x512xf32>, vector<8x512xf32> -> vector<8x512xf32>
    %c0_17 = arith.constant 0 : index
    %c0_18 = arith.constant 0 : index
    %46 = vector.load %arg4[%c0_17, %c0_18] : memref<8x512xf32, #tpu.memory_space<vmem>>, vector<8x512xf32>
    tpu.vector_store %arg4[%c0_17, %c0_18], %45 {strides = array<i32>} : memref<8x512xf32, #tpu.memory_space<vmem>>, vector<8x512xf32>,
    return
  }
  func.func @transform_0(%arg0: i32) -> (i32, i32) {
    %c0_i32 = arith.constant 0 : i32
    %c0_i32_0 = arith.constant 0 : i32
    %c0_i32_1 = arith.constant 0 : i32
    return %c0_i32, %c0_i32_0 : i32, i32
  }
  func.func @transform_1(%arg0: i32) -> (i32, i32) {
    %c0_i32 = arith.constant 0 : i32
    %c0_i32_0 = arith.constant 0 : i32
    %c0_i32_1 = arith.constant 0 : i32
    return %c0_i32, %c0_i32_0 : i32, i32
  }
  func.func @transform_2(%arg0: i32) -> (i32, i32) {
    %c0_i32 = arith.constant 0 : i32
    %c0_i32_0 = arith.constant 0 : i32
    %c0_i32_1 = arith.constant 0 : i32
    return %c0_i32, %c0_i32_0 : i32, i32
  }
  func.func @transform_3(%arg0: i32) -> (i32, i32) {
    %c0_i32 = arith.constant 0 : i32
    %c0_i32_0 = arith.constant 0 : i32
    %c0_i32_1 = arith.constant 0 : i32
    return %c0_i32, %c0_i32_0 : i32, i32
  }
}

</mosaic_0001>

<bundles_post_ra>
// kernel: tpu_custom_call.1
= control target key start
LH: loop header
LB: loop body
LE: loop exit
PB: predicated region body
PF: predicated region fallthrough
CT: control target
= control target key end

     0   :  { %8 = vsyncpa [#allocation4], 0  ;;  %s771_s0 = inlined_call_operand.hbm [shape: f32[8,512], index: 0, kind: input, shape index: {}]   ;;  %s772_s1 = inlined_call_operand.hbm [shape: f32[8,72], index: 1, kind: input, shape index: {}]   ;;  %s773_s2 = inlined_call_operand.hbm [shape: f32[9,512], index: 2, kind: input, shape index: {}]   ;;  %s774_s3 = inlined_call_operand.hbm [shape: f32[8,512], index: 3, kind: output, shape index: {}]  }
   0x1   :  { %9 = vsyncpa [#allocation7], 0  ;;  %s27_s14 = sshll.u32 %s772_s1, 4  ;;  %s28_s14 = int_to_ptr.hbm [resolvable:$true] %s27_s14 }
   0x2   :  { %10 = vsyncpa [#allocation5], 0  ;;  %s543_s15 = smov [#allocation6]   ;;  %s16_s19 = sshll.u32 %s771_s0, 4  ;;  %s17_s19 = int_to_ptr.hbm [resolvable:$true] %s16_s19 }
   0x3   :  { %s29_s16 = sshll.u32 %s543_s15, 4  ;;  %s544_s20 = smov [#allocation3]   ;;  %s30_s16 = int_to_ptr.vmem [resolvable:$true] %s29_s16 }
   0x4   :  { %32 = dma.hbm_to_vmem [thread:$0]  %s28_s14, 128, %s30_s16, [#allocation7]  }
   0x5   :  { %s18_s21 = sshll.u32 %s544_s20, 4  ;;  %s37_s24 = sshll.u32 %s773_s2, 4  ;;  %s19_s21 = int_to_ptr.vmem [resolvable:$true] %s18_s21  ;;  %s38_s24 = int_to_ptr.hbm [resolvable:$true] %s37_s24 }
   0x6   :  { %21 = dma.hbm_to_vmem [thread:$0]  %s17_s19, 512, %s19_s21, [#allocation4]  }
   0x7   :  { %s545_s1 = smov [#allocation8]   ;;  %s546_s26 = smov 512  }
   0x8   :  { %s39_s25 = sshll.u32 %s545_s1, 4  ;;  %s547_s27 = smov 32   ;;  %s40_s25 = int_to_ptr.vmem [resolvable:$true] %s39_s25 }
   0x9   :  { %45 = dma.hbm_to_vmem [thread:$0]  %s38_s24, 1024, %s40_s25, [#allocation7], %s546_s26, %s546_s26, %s547_s27  }
   0xa   :  { %537 = dma.done.wait [#allocation4], 512  }
   0xb   :  { %538 = vsyncadd [#allocation4], 4294966784 }
   0xc   :  { %539 = dma.done.wait [#allocation7], 1152  }
   0xd   :  { %540 = vsyncadd [#allocation7], 4294966144  ;;  %v586_v0 = vld [vmem:[#allocation3 + $0x18] sm:$0xff]  ;;  %v588_v1 = vld [vmem:[#allocation3 + $0x10] sm:$0xff]  ;;  %s548_s0 = smov 111   ;;  %s549_s2 = smov 112   ;;  %v78_v6 = vlaneseq }
   0xe   :  { %v590_v2 = vld [vmem:[#allocation3] sm:$0xff]  ;;  %257 = vrot.lane.b32.xlu1 %v586_v0, %s548_s0  ;;  %230 = vrot.lane.b32.xlu2 %v588_v1, %s549_s2  ;;  %s550_s28 = smov 113   ;;  %s551_s29 = smov 127   ;;  %v604_v3 = vld [vmem:[#allocation3 + $0x8] sm:$0xff]  ;;  %v635_v15 = vld [vmem:[#allocation8 + $0x10] sm:$0xff]  ;;  %vm313_vm8 = vcmask 588800  }
   0xf   :  { %251 = vrot.lane.b32.xlu0 %v590_v2, %s548_s0  ;;  %s552_s30 = smov 1   ;;  %s553_s4 = smov 15   ;;  %v628_v7 = vand.u32 127, %v78_v6  ;;  %v437_v8 = vld [vmem:[#allocation8 + $0x38] ss:$0 sm:$0xff]  ;;  %v241_v21 = vperm.slane %v635_v15, 7 }
  0x10   :  { %s554_s5 = smov 16   ;;  %s555_s6 = smov 17   ;;  %v633_v14 = vld [vmem:[#allocation8 + $0x18] sm:$0xff]  ;;  %v438_v17 = vld [vmem:[#allocation8 + $0x30] ss:$0 sm:$0xff]  ;;  %v216_v28 = vperm.slane %v635_v15, 6 }
  0x11   :  { %vm259_vm0 = vcmp.lt.s32.totalorder %v628_v7, 111  ;;  %v242_v16 = vperm.slane %v633_v14, 7  ;;  %vm234_vm1 = vcmp.lt.s32.totalorder %v628_v7, 112  ;;  %vm209_vm2 = vcmp.lt.s32.totalorder %v628_v7, 113  ;;  %v439_v46 = vld [vmem:[#allocation8 + $0x20] ss:$0 sm:$0xff] }
  0x12   :  { %v217_v29 = vperm.slane %v633_v14, 6  ;;  %v191_v37 = vperm.slane %v635_v15, 5  ;;  %vm184_vm3 = vcmp.lt.s32.totalorder %v628_v7, 127  ;;  %v192_v38 = vperm.slane %v633_v14, 5  ;;  %v440_v47 = vld [vmem:[#allocation8 + $0x28] ss:$0 sm:$0xff] }
  0x13   :  { %v671_v49 = vld [vmem:[#allocation8] sm:$0xff]  ;;  %v673_v50 = vld [vmem:[#allocation8 + $0x8] sm:$0xff]  ;;  %vm155_vm4 = vcmp.lt.s32.totalorder %v628_v7, 1  ;;  %v162_v6 = vperm.slane %v635_v15, 3  ;;  %vm130_vm5 = vcmp.lt.s32.totalorder %v628_v7, 15  ;;  %vm105_vm6 = vcmp.lt.s32.totalorder %v628_v7, 16 }
  0x14   :  { %v239_v52 = vperm.slane %v671_v49, 7  ;;  %v240_v53 = vperm.slane %v673_v50, 7  ;;  %v214_v60 = vperm.slane %v671_v49, 6  ;;  %v215_v61 = vperm.slane %v673_v50, 6  ;;  %s556_s7 = smov [#allocation9]   ;;  %s408_s11 = sshll.u32 %s774_s3, 4  ;;  %s409_s11 = int_to_ptr.hbm [resolvable:$true] %s408_s11 }
  0x15   :  { %vm80_vm7 = vcmp.lt.s32.totalorder %v628_v7, 17  ;;  %s406_s8 = sshll.u32 %s556_s7, 4  ;;  %s407_s8 = int_to_ptr.vmem [resolvable:$true] %s406_s8 }
  0x16   :  { %232 = vrot.lane.b32.xlu2 %v586_v0, %s549_s2  ;;  %226 = vrot.lane.b32.xlu1 %v590_v2, %s549_s2 }
  0x17   :  { %255 = vrot.lane.b32.xlu0 %v588_v1, %s548_s0 }
  0x1e   :  { %207 = vrot.lane.b32.xlu2 %v586_v0, %s550_s28  ;;  %205 = vrot.lane.b32.xlu1 %v588_v1, %s550_s28 }
  0x1f   :  { %201 = vrot.lane.b32.xlu0 %v590_v2, %s550_s28 }
  0x26   :  { %182 = vrot.lane.b32.xlu2 %v586_v0, %s551_s29  ;;  %180 = vrot.lane.b32.xlu1 %v588_v1, %s551_s29 }
  0x27   :  { %176 = vrot.lane.b32.xlu0 %v590_v2, %s551_s29 }
  0x2e   :  { %149 = vrot.lane.b32.xlu2 %v604_v3, %s552_s30  ;;  %228 = vrot.lane.b32.xlu1 %v604_v3, %s549_s2 }
  0x2f   :  { %253 = vrot.lane.b32.xlu0 %v604_v3, %s548_s0 }
  0x36   :  { %203 = vrot.lane.b32.xlu2 %v604_v3, %s550_s28  ;;  %153 = vrot.lane.b32.xlu1 %v586_v0, %s552_s30 }
  0x37   :  { %151 = vrot.lane.b32.xlu0 %v588_v1, %s552_s30 }
  0x3e   :  { %128 = vrot.lane.b32.xlu2 %v586_v0, %s553_s4  ;;  %126 = vrot.lane.b32.xlu1 %v588_v1, %s553_s4 }
  0x3f   :  { %124 = vrot.lane.b32.xlu0 %v604_v3, %s553_s4 }
  0x46   :  { %101 = vrot.lane.b32.xlu2 %v588_v1, %s554_s5  ;;  %99 = vrot.lane.b32.xlu1 %v604_v3, %s554_s5 }
  0x47   :  { %178 = vrot.lane.b32.xlu0 %v604_v3, %s551_s29 }
  0x4e   :  { %74 = vrot.lane.b32.xlu2 %v588_v1, %s555_s6  ;;  %72 = vrot.lane.b32.xlu1 %v604_v3, %s555_s6 }
  0x4f   :  { %103 = vrot.lane.b32.xlu0 %v586_v0, %s554_s5 }
  0x56   :  { %122 = vrot.lane.b32.xlu2 %v590_v2, %s553_s4  ;;  %147 = vrot.lane.b32.xlu1 %v590_v2, %s552_s30 }
  0x57   :  { %76 = vrot.lane.b32.xlu0 %v586_v0, %s555_s6 }
  0x5e   :  { %70 = vrot.lane.b32.xlu1 %v590_v2, %s555_s6 }
  0x5f   :  { %97 = vrot.lane.b32.xlu0 %v590_v2, %s554_s5 }
  0x68   :  { %v626_v4 = vpop.permute.xlu2 %230 }
  0x70   :  { %v233_v5 = vpop.permute.xlu2 %232 }
  0x71   :  { %v235_v22 = vsel %vm234_vm1, %v626_v4, %v233_v5 }
  0x72   :  { %v245_v27 = vmul.f32 %v241_v21, %v235_v22 }
  0x78   :  { %v208_v9 = vpop.permute.xlu2 %207 }
  0x80   :  { %v258_v10 = vpop.permute.xlu1 %257  ;;  %v183_v23 = vpop.permute.xlu2 %182 }
  0x81   :  { %v252_v11 = vpop.permute.xlu0 %251 }
  0x82   :  { %v263_v12 = vsel %vm259_vm0, %v258_v10, %v252_v11 }
  0x83   :  { %v271_v13 = vmul.f32 %v437_v8, %v263_v12  ;;  %v163_v8 = vperm.slane %v633_v14, 3 }
  0x85   :  { %384 = vmatpush.msra.mxu3 %v271_v13 }
  0x88   :  { %v227_v18 = vpop.permute.xlu1 %226  ;;  %v654_v36 = vpop.permute.xlu2 %149 }
  0x89   :  { %v238_v19 = vsel %vm234_vm1, %v233_v5, %v227_v18  ;;  %v256_v20 = vpop.permute.xlu0 %255 }
  0x8a   :  { %v260_v24 = vsel %vm259_vm0, %v256_v20, %v258_v10  ;;  %v246_v25 = vmul.f32 %v242_v16, %v238_v19  ;;  %v137_v19 = vperm.slane %v635_v15, 2 }
  0x8b   :  { %v270_v26 = vmul.f32 %v438_v17, %v260_v24 }
  0x8c   :  { %385 = vmatpush.msra.mxu3 %v246_v25 }
  0x8d   :  { %364 = vmatpush.msra.mxu2 %v270_v26 }
  0x8f   :  { %365 = vmatpush.msra.mxu2 %v245_v27  ;;  %v112_v27 = vperm.slane %v635_v15, 1 }
  0x90   :  { %v206_v30 = vpop.permute.xlu1 %205  ;;  %v204_v45 = vpop.permute.xlu2 %203 }
  0x91   :  { %v210_v31 = vsel %vm209_vm2, %v206_v30, %v208_v9  ;;  %v202_v32 = vpop.permute.xlu0 %201  ;;  %v211_v62 = vsel %vm209_vm2, %v204_v45, %v206_v30 }
  0x92   :  { %v213_v33 = vsel %vm209_vm2, %v208_v9, %v202_v32  ;;  %v220_v34 = vmul.f32 %v216_v28, %v210_v31  ;;  %v212_v63 = vsel %vm209_vm2, %v202_v32, %v204_v45  ;;  %v219_v5 = vmul.f32 %v215_v61, %v211_v62 }
  0x93   :  { %v221_v35 = vmul.f32 %v217_v29, %v213_v33  ;;  %v189_v28 = vperm.slane %v671_v49, 5  ;;  %v190_v29 = vperm.slane %v673_v50, 5 }
  0x94   :  { %366 = vmatpush.msra.mxu2 %v220_v34 }
  0x95   :  { %386 = vmatpush.msra.mxu3 %v221_v35 }
  0x98   :  { %v659_v39 = vpop.permute.xlu1 %180  ;;  %v695_v9 = vpop.permute.xlu2 %128 }
  0x99   :  { %v185_v40 = vsel %vm184_vm3, %v659_v39, %v183_v23  ;;  %v664_v41 = vpop.permute.xlu0 %176 }
  0x9a   :  { %v188_v42 = vsel %vm184_vm3, %v183_v23, %v664_v41  ;;  %v195_v43 = vmul.f32 %v191_v37, %v185_v40 }
  0x9b   :  { %v196_v44 = vmul.f32 %v192_v38, %v188_v42  ;;  %v87_v42 = vperm.slane %v635_v15, 0 }
  0x9c   :  { %367 = vmatpush.msra.mxu2 %v195_v43  ;;  %v113_v43 = vperm.slane %v633_v14, 1 }
  0x9d   :  { %387 = vmatpush.msra.mxu3 %v196_v44 }
  0x9e   :  { %368 = vmatpush.msra.mxu2 %v588_v1 }
  0x9f   :  { %388 = vmatpush.msra.mxu3 %v586_v0 }
  0xa0   :  { %v229_v48 = vpop.permute.xlu1 %228  ;;  %v102_v23 = vpop.permute.xlu2 %101 }
  0xa1   :  { %v254_v51 = vpop.permute.xlu0 %253  ;;  %v236_v54 = vsel %vm234_vm1, %v229_v48, %v626_v4  ;;  %v237_v55 = vsel %vm234_vm1, %v227_v18, %v229_v48  ;;  %v218_v4 = vmul.f32 %v214_v60, %v212_v63  ;;  %v138_v18 = vperm.slane %v633_v14, 2 }
  0xa2   :  { %v262_v56 = vsel %vm259_vm0, %v252_v11, %v254_v51  ;;  %v261_v57 = vsel %vm259_vm0, %v254_v51, %v256_v20  ;;  %v243_v0 = vmul.f32 %v239_v52, %v237_v55  ;;  %v244_v1 = vmul.f32 %v240_v53, %v236_v54 }
  0xa3   :  { %v268_v58 = vmul.f32 %v439_v46, %v262_v56  ;;  %v269_v59 = vmul.f32 %v440_v47, %v261_v57  ;;  %v276_v47 = vld [vmem:[#allocation6] sm:$0xff]  ;;  %v88_v51 = vperm.slane %v633_v14, 0  ;;  %v135_v53 = vperm.slane %v671_v49, 2 }
  0xa4   :  { %v136_v54 = vperm.slane %v673_v50, 2 }
  0xa5   :  { %324 = vmatpush.msra.mxu0 %v268_v58  ;;  %344 = vmatpush.msra.mxu1 %v269_v59 }
  0xa7   :  { %325 = vmatpush.msra.mxu0 %v243_v0  ;;  %345 = vmatpush.msra.mxu1 %v244_v1  ;;  %v111_v1 = vperm.slane %v673_v50, 1 }
  0xa8   :  { %v697_v10 = vpop.permute.xlu1 %153  ;;  %v75_v40 = vpop.permute.xlu2 %74 }
  0xa9   :  { %326 = vmatpush.msra.mxu0 %v218_v4  ;;  %346 = vmatpush.msra.mxu1 %v219_v5  ;;  %v152_v11 = vpop.permute.xlu0 %151 }
  0xaa   :  { %v156_v12 = vsel %vm155_vm4, %v152_v11, %v697_v10  ;;  %v157_v13 = vsel %vm155_vm4, %v654_v36, %v152_v11 }
  0xab   :  { %v166_v16 = vmul.f32 %v162_v6, %v157_v13  ;;  %v167_v17 = vmul.f32 %v163_v8, %v156_v12  ;;  %v85_v6 = vperm.slane %v671_v49, 0  ;;  %v86_v8 = vperm.slane %v673_v50, 0 }
  0xad   :  { %369 = vmatpush.msra.mxu2 %v166_v16  ;;  %389 = vmatpush.msra.mxu3 %v167_v17 }
  0xb0   :  { %v127_v20 = vpop.permute.xlu1 %126  ;;  %v123_v15 = vpop.permute.xlu2 %122 }
  0xb1   :  { %v131_v21 = vsel %vm130_vm5, %v127_v20, %v695_v9  ;;  %v125_v22 = vpop.permute.xlu0 %124  ;;  %v134_v55 = vsel %vm130_vm5, %v695_v9, %v123_v15 }
  0xb2   :  { %v132_v24 = vsel %vm130_vm5, %v125_v22, %v127_v20  ;;  %v142_v25 = vmul.f32 %v138_v18, %v131_v21  ;;  %v133_v56 = vsel %vm130_vm5, %v123_v15, %v125_v22  ;;  %v139_v63 = vmul.f32 %v135_v53, %v134_v55 }
  0xb3   :  { %v141_v26 = vmul.f32 %v137_v19, %v132_v24  ;;  %v140_v0 = vmul.f32 %v136_v54, %v133_v56 }
  0xb4   :  { %390 = vmatpush.msra.mxu3 %v142_v25 }
  0xb5   :  { %370 = vmatpush.msra.mxu2 %v141_v26 }
  0xb8   :  { %v100_v30 = vpop.permute.xlu1 %99 }
  0xb9   :  { %v107_v31 = vsel %vm105_vm6, %v100_v30, %v102_v23  ;;  %v179_v32 = vpop.permute.xlu0 %178 }
  0xba   :  { %v186_v33 = vsel %vm184_vm3, %v179_v32, %v659_v39  ;;  %v187_v34 = vsel %vm184_vm3, %v664_v41, %v179_v32  ;;  %v116_v35 = vmul.f32 %v112_v27, %v107_v31 }
  0xbb   :  { %v193_v37 = vmul.f32 %v189_v28, %v187_v34  ;;  %v194_v38 = vmul.f32 %v190_v29, %v186_v33 }
  0xbc   :  { %371 = vmatpush.msra.mxu2 %v116_v35 }
  0xbd   :  { %327 = vmatpush.msra.mxu0 %v193_v37  ;;  %347 = vmatpush.msra.mxu1 %v194_v38 }
  0xbf   :  { %328 = vmatpush.msra.mxu0 %v590_v2  ;;  %348 = vmatpush.msra.mxu1 %v604_v3  ;;  %v160_v2 = vperm.slane %v671_v49, 3  ;;  %v161_v3 = vperm.slane %v673_v50, 3 }
  0xc0   :  { %v73_v39 = vpop.permute.xlu1 %72 }
  0xc1   :  { %v82_v41 = vsel %vm80_vm7, %v73_v39, %v75_v40  ;;  %v104_v44 = vpop.permute.xlu0 %103 }
  0xc2   :  { %v106_v45 = vsel %vm105_vm6, %v102_v23, %v104_v44  ;;  %v91_v46 = vmul.f32 %v87_v42, %v82_v41 }
  0xc3   :  { %v117_v48 = vmul.f32 %v113_v43, %v106_v45 }
  0xc4   :  { %372 = vmatpush.msra.mxu2 %v91_v46 }
  0xc5   :  { %391 = vmatpush.msra.mxu3 %v117_v48  ;;  %421 = vmatmul.msk.f32.vlgmr.msra.gmra.mxu2 %vm313_vm8, %v276_v47 }
  0xc8   :  { %v148_v52 = vpop.permute.xlu1 %147 }
  0xc9   :  { %v158_v57 = vsel %vm155_vm4, %v148_v52, %v654_v36  ;;  %v159_v14 = vsel %vm155_vm4, %v697_v10, %v148_v52  ;;  %v77_v58 = vpop.permute.xlu0 %76  ;;  %v110_v36 = vperm.slane %v671_v49, 1 }
  0xca   :  { %v81_v59 = vsel %vm80_vm7, %v75_v40, %v77_v58  ;;  %v164_v60 = vmul.f32 %v160_v2, %v159_v14  ;;  %v165_v61 = vmul.f32 %v161_v3, %v158_v57 }
  0xcb   :  { %v92_v62 = vmul.f32 %v88_v51, %v81_v59 }
  0xcc   :  { %329 = vmatpush.msra.mxu0 %v164_v60  ;;  %349 = vmatpush.msra.mxu1 %v165_v61 }
  0xcd   :  { %392 = vmatpush.msra.mxu3 %v92_v62 }
  0xce   :  { %330 = vmatpush.msra.mxu0 %v139_v63  ;;  %350 = vmatpush.msra.mxu1 %v140_v0 }
  0xcf   :  { %422 = vmatmul.msk.f32.vlgmr.msra.gmra.mxu3 %vm313_vm8, %v276_v47 }
  0xd0   :  { %v71_v4 = vpop.permute.xlu1 %70 }
  0xd1   :  { %v98_v5 = vpop.permute.xlu0 %97  ;;  %v83_v9 = vsel %vm80_vm7, %v71_v4, %v73_v39  ;;  %v84_v10 = vsel %vm80_vm7, %v77_v58, %v71_v4 }
  0xd2   :  { %v108_v11 = vsel %vm105_vm6, %v98_v5, %v100_v30  ;;  %v109_v12 = vsel %vm105_vm6, %v104_v44, %v98_v5  ;;  %v89_v17 = vmul.f32 %v85_v6, %v84_v10  ;;  %v90_v49 = vmul.f32 %v86_v8, %v83_v9 }
  0xd3   :  { %v114_v13 = vmul.f32 %v110_v36, %v109_v12  ;;  %v115_v16 = vmul.f32 %v111_v1, %v108_v11 }
  0xd5   :  { %331 = vmatpush.msra.mxu0 %v114_v13  ;;  %351 = vmatpush.msra.mxu1 %v115_v16 }
  0xd7   :  { %332 = vmatpush.msra.mxu0 %v89_v17  ;;  %352 = vmatpush.msra.mxu1 %v90_v49 }
  0xd8   :  { %419 = vmatmul.msk.f32.vlgmr.msra.gmra.mxu0 %vm313_vm8, %v276_v47  ;;  %420 = vmatmul.msk.f32.vlgmr.msra.gmra.mxu1 %vm313_vm8, %v276_v47 }
 0x148   :  { %v374_v50 = vpop.f32.mrf.mxu2 }
 0x149   :  { %399 = vst [vmem:[#allocation9 + $0x10] sm:$0xff] %v374_v50 }
 0x152   :  { %v394_v18 = vpop.f32.mrf.mxu3 }
 0x153   :  { %400 = vst [vmem:[#allocation9 + $0x18] sm:$0xff] %v394_v18 }
 0x155   :  { %v334_v7 = vpop.f32.mrf.mxu0  ;;  %v354_v19 = vpop.f32.mrf.mxu1 }
 0x156   :  { %397 = vst [vmem:[#allocation9] sm:$0xff] %v334_v7 }
 0x157   :  { %398 = vst [vmem:[#allocation9 + $0x8] sm:$0xff] %v354_v19 }
 0x158   :  { %411 = dma.vmem_to_hbm [thread:$0]  %s407_s8, 512, %s409_s11, [#allocation5]  }
 0x159   :  { %541 = dma.done.wait [#allocation5], 512  }
 0x15a   :  { %542 = vsyncadd [#allocation5], 4294966784 }
 0x15b   :  { %416 = vsyncpa [#allocation4], 1 }
 0x15c   :  { %417 = vsyncpa [#allocation7], 1 }
 0x15d   :  { %418 = vsyncpa [#allocation5], 1 }

</bundles_post_ra>
